<compile_context>
chip_gen: v7x
topology: tpu7x:2x2x1
jax: 0.10.0
libtpu: 0.0.40
codegen_flags: <defaults>
</compile_context>

<pallas_src>
import functools

import jax
import jax.numpy as jnp
from jax import lax
from jax.experimental import pallas as pl
from jax.experimental.pallas import tpu as pltpu


def _round_up(x, m):
    return ((x + m - 1) // m) * m


def _vmem_capacity_bytes():
    try:
        return int(pltpu.get_tpu_info().vmem_capacity_bytes)
    except Exception:
        return 64 * 1024 * 1024  # conservative fallback (v7x per-TensorCore)


def _pick_time_tile(T, F_pad, D_pad, in_itemsize, w_itemsize, budget_bytes):
    """Largest MXU-aligned time tile whose full VMEM footprint fits the budget.

    Footprint per tile: double-buffered frames slab (2*TT*F*in_itemsize),
    f32 (TT, D) matmul output, double-buffered w_enc, small residents.
    """
    fixed = (2 * F_pad * D_pad * w_itemsize      # w_enc (double-buffered)
             + 2 * 2 * D_pad * 4                 # b_enc + w_cls (double-buffered)
             + 8 * D_pad * 4)                    # (8, D) max accumulator
    per_row = 2 * F_pad * in_itemsize + D_pad * 4
    avail = max(budget_bytes - fixed, 8 * per_row)
    max_tt = max(8, avail // per_row)
    target = int(min(max_tt, 2048))              # DMA efficiency saturates ~2K rows
    t8 = _round_up(T, 8)
    if t8 <= target:
        return int(t8)                           # whole (padded) T in one tile
    for align in (256, 128, 8):                  # prefer MXU-M-aligned tiles
        tt = (target // align) * align
        if tt >= align:
            return int(tt)
    return 8


def _w2v_classifier_kernel(frames_ref, w_enc_ref, b_enc_ref, w_cls_ref,
                           b_cls_ref, out_ref, acc_ref, *, t_real, t_pad):
    """One (batch, time-tile) grid step.

    frames_ref : (TT, F_pad)  VMEM  frames tile for this batch element
    w_enc_ref  : (F_pad, D_pad) VMEM encoder projection weight
    b_enc_ref  : (1, D_pad)   VMEM  encoder bias
    w_cls_ref  : (1, D_pad)   VMEM  classifier weight (row layout)
    b_cls_ref  : (1, 1)       SMEM  classifier bias (scalar)
    out_ref    : (1, 1)       VMEM  logit for this batch element
    acc_ref    : (8, D_pad)   VMEM  running max-over-time accumulator (f32)
    """
    ti = pl.program_id(1)
    tt = frames_ref.shape[0]
    d_pad = acc_ref.shape[1]

    @pl.when(ti == 0)
    def _init():
        acc_ref[...] = jnp.full(acc_ref.shape, -jnp.inf, acc_ref.dtype)

    # Encoder: linear frame projection on the MXU, f32 accumulation.
    feats = jnp.dot(frames_ref[...], w_enc_ref[...],
                    preferred_element_type=jnp.float32)            # (TT, D_pad)

    # Ragged T: mask wrapper-padded time rows to -inf so they never win the max.
    if t_pad != t_real:  # static (baked at trace time)
        row = lax.broadcasted_iota(jnp.int32, (tt, d_pad), 0) + ti * tt
        feats = jnp.where(row < t_real, feats, -jnp.inf)

    # VPU tree max: fold TT rows into the (8, D_pad) accumulator elementwise
    # (keeps the XLU off the per-tile critical path).
    acc_ref[...] = jnp.maximum(
        acc_ref[...], jnp.max(feats.reshape(tt // 8, 8, d_pad), axis=0))

    @pl.when(ti == pl.num_programs(1) - 1)
    def _finalize():
        # Single cross-sublane reduce; encoder bias added once (T-invariant).
        pooled = jnp.max(acc_ref[...], axis=0, keepdims=True) + b_enc_ref[...]
        # Dropout(p=0) -> identity.
        # Linear(D, 1) as VPU multiply + row reduction (avoids N=1 MXU matmul).
        logit = jnp.sum(pooled * w_cls_ref[...], axis=-1, keepdims=True)
        out_ref[...] = (logit + b_cls_ref[0, 0]).astype(out_ref.dtype)


def binary_w2v_classifier(frames, w_enc, b_enc, w_cls_row, b_cls, *,
                          time_tile=None, compute_dtype=None):
    """frames: (B, T, F); w_enc: (F, D); b_enc: (1, D); w_cls_row: (1, D)
    (torch Linear(D,1).weight layout); b_cls: (1, 1).  Returns logits (B, 1).

    compute_dtype=jnp.bfloat16 casts the mem-bound frames stream and w_enc
    (f32 accumulation kept) -- ~2x HBM bytes saved on v6e/v7x.
    """
    B, T, F = frames.shape
    Fw, D = w_enc.shape
    assert Fw == F

    if compute_dtype is not None:
        frames = frames.astype(compute_dtype)
        w_enc = w_enc.astype(compute_dtype)

    # Lane-dense padding: F (MXU K) and D (MXU N / lanes) up to 128 multiples.
    F_pad = _round_up(F, 128)
    D_pad = _round_up(D, 128)

    # Generation-specific VMEM budgets (64 MiB/TC on v7x, 128 MiB on v5e/v6e).
    vmem_cap = _vmem_capacity_bytes()
    tile_budget = vmem_cap // 4
    vmem_limit = max(32 * 1024 * 1024, vmem_cap - 24 * 1024 * 1024)

    if time_tile is None:
        time_tile = _pick_time_tile(T, F_pad, D_pad, frames.dtype.itemsize,
                                    w_enc.dtype.itemsize, tile_budget)
    time_tile = max(8, _round_up(int(time_tile), 8))
    T_pad = _round_up(T, time_tile)
    n_t = T_pad // time_tile

    # Zero-pad (math unchanged; padded time rows masked to -inf in-kernel,
    # zero K-columns contribute 0, padded D-columns meet zero classifier wts).
    if (T_pad, F_pad) != (T, F):
        frames = jnp.pad(frames, ((0, 0), (0, T_pad - T), (0, F_pad - F)))
    if (F_pad, D_pad) != (F, D):
        w_enc = jnp.pad(w_enc, ((0, F_pad - F), (0, D_pad - D)))
    if D_pad != D:
        b_enc = jnp.pad(b_enc, ((0, 0), (0, D_pad - D)))
        w_cls_row = jnp.pad(w_cls_row, ((0, 0), (0, D_pad - D)))

    in_itemsize = frames.dtype.itemsize
    w_itemsize = w_enc.dtype.itemsize
    cost = pl.CostEstimate(
        flops=2 * B * T_pad * F_pad * D_pad + 2 * B * D_pad,
        transcendentals=0,
        bytes_accessed=(B * T_pad * F_pad * in_itemsize
                        + F_pad * D_pad * w_itemsize
                        + 3 * D_pad * 4 + 4 + B * 4),
    )

    kernel = functools.partial(_w2v_classifier_kernel, t_real=T, t_pad=T_pad)

    out = pl.pallas_call(
        kernel,
        out_shape=jax.ShapeDtypeStruct((B, 1, 1), jnp.float32),
        grid_spec=pltpu.PrefetchScalarGridSpec(
            num_scalar_prefetch=0,
            grid=(B, n_t),
            in_specs=[
                # Batch dim squeezed -> kernel sees a 2D (TT, F_pad) dot operand.
                pl.BlockSpec((None, time_tile, F_pad), lambda b, t: (b, t, 0)),
                pl.BlockSpec((F_pad, D_pad), lambda b, t: (0, 0)),
                pl.BlockSpec((1, D_pad), lambda b, t: (0, 0)),
                pl.BlockSpec((1, D_pad), lambda b, t: (0, 0)),
                # Scalar classifier bias lives in SMEM (no VMEM tile / DMA stream).
                pl.BlockSpec(memory_space=pltpu.MemorySpace.SMEM),
            ],
            out_specs=pl.BlockSpec((None, 1, 1), lambda b, t: (b, 0, 0)),
            scratch_shapes=[pltpu.VMEM((8, D_pad), jnp.float32)],
        ),
        compiler_params=pltpu.CompilerParams(
            # batch -> parallel (megacore sharding), time -> sequential reduction.
            dimension_semantics=("parallel", "arbitrary"),
            vmem_limit_bytes=int(vmem_limit),
        ),
        cost_estimate=cost,
    )(frames, w_enc, b_enc, w_cls_row, b_cls)
    return out.reshape(B, 1)


def reference(frames, w_enc, b_enc, w_cls_row, b_cls):
    feats = jnp.einsum("btf,fd->btd", frames, w_enc) + b_enc   # encoder
    pooled = jnp.max(feats, axis=1)                            # max over time
    return pooled @ w_cls_row.T + b_cls                        # Linear(D, 1)


if __name__ == "__main__":
    # Small shapes consistent with the module's forward.
    B = 2          # batch
    F = 64         # frame length (synthetic encoder receptive field)
    T = 32         # time steps after encoding
    L = T * F      # raw waveform length = 2048
    D = 32         # encoder.output_size

    key = jax.random.PRNGKey(0)
    k_wav, k_we, k_be, k_wc, k_bc = jax.random.split(key, 5)

    wav = jax.random.normal(k_wav, (B, L), dtype=jnp.float32)
    # Glue (plain JAX): frame the waveform for the synthetic encoder.
    frames = wav.reshape(B, T, F)

    # Deterministic parameter init (synthetic; not a checkpoint load).
    w_enc = jax.random.normal(k_we, (F, D), dtype=jnp.float32) * 0.05
    b_enc = jax.random.normal(k_be, (1, D), dtype=jnp.float32) * 0.01
    w_cls = jax.random.normal(k_wc, (1, D), dtype=jnp.float32) * 0.1   # Linear(D,1).weight layout
    b_cls = jax.random.normal(k_bc, (1, 1), dtype=jnp.float32) * 0.01

    # TODO(synk): padding_mask handling lives in the real wav2vec encoder; the
    # synthetic encoder ignores it (mask=None path).  The in-kernel -inf row
    # mask used for ragged T is the mechanism a padded batch would reuse.

    ref = reference(frames, w_enc, b_enc, w_cls, b_cls)

    # 1) Default path: picker chooses a single time tile per batch element
    #    (fast path for small T per the perf review).
    out = jax.block_until_ready(
        binary_w2v_classifier(frames, w_enc, b_enc, w_cls, b_cls))
    assert out.shape == (B, 1)
    assert jnp.allclose(out, ref, atol=1e-4, rtol=1e-4), (out, ref)

    # 2) Multi-tile reduction + ragged-T masking path (T=28 padded to 32).
    frames_r = frames[:, :28, :]
    ref_r = reference(frames_r, w_enc, b_enc, w_cls, b_cls)
    out_r = jax.block_until_ready(
        binary_w2v_classifier(frames_r, w_enc, b_enc, w_cls, b_cls, time_tile=8))
    assert jnp.allclose(out_r, ref_r, atol=1e-4, rtol=1e-4), (out_r, ref_r)

    # 3) bf16-input path (v6e/v7x mem-bound win); accumulation stays f32.
    out_bf16 = jax.block_until_ready(
        binary_w2v_classifier(frames, w_enc, b_enc, w_cls, b_cls,
                              compute_dtype=jnp.bfloat16))
    assert jnp.allclose(out_bf16, ref, atol=1e-1, rtol=1e-1), (out_bf16, ref)

    print("KERNEL_OK")
</pallas_src>

<mosaic_0001>
module attributes {stable_mosaic.version = 11 : i64} {
  func.func @_w2v_classifier_kernel(%arg0: i32, %arg1: i32, %arg2: memref<1x32x128xf32, #tpu.memory_space<vmem>>, %arg3: memref<128x128xf32, #tpu.memory_space<vmem>>, %arg4: memref<1x128xf32, #tpu.memory_space<vmem>>, %arg5: memref<1x128xf32, #tpu.memory_space<vmem>>, %arg6: memref<1x1xf32, #tpu.memory_space<smem>>, %arg7: memref<1x1x1xf32, #tpu.memory_space<vmem>>, %arg8: memref<8x128xf32, #tpu.memory_space<vmem>>) attributes {dimension_semantics = [#tpu.dimension_semantics<parallel>, #tpu.dimension_semantics<arbitrary>], iteration_bounds = array<i64: 2, 1>, scalar_prefetch = 0 : i64, scratch_operands = 1 : i64, tpu.core_type = #tpu.core_type<tc>, window_params = [{transform_indices = @transform_0, window_bounds = array<i64: 1, 32, 128>}, {pipeline_mode = #tpu.pipeline_mode<synchronous>, transform_indices = @transform_1, window_bounds = array<i64: 128, 128>}, {pipeline_mode = #tpu.pipeline_mode<synchronous>, transform_indices = @transform_2, window_bounds = array<i64: 1, 128>}, {pipeline_mode = #tpu.pipeline_mode<synchronous>, transform_indices = @transform_3, window_bounds = array<i64: 1, 128>}, {transform_indices = @transform_4, window_bounds = array<i64: 1, 1>}, {transform_indices = @transform_5, window_bounds = array<i64: 1, 1, 1>}]} {
    %c0_i32 = arith.constant 0 : i32
    %0 = arith.cmpi eq, %arg1, %c0_i32 : i32
    %1 = arith.extui %0 : i1 to i32
    %c0_i32_0 = arith.constant 0 : i32
    %2 = arith.cmpi ne, %1, %c0_i32_0 : i32
    scf.if %2 {
      %cst_12 = arith.constant 0xFF800000 : f32
      %15 = vector.broadcast %cst_12 : f32 to vector<8x128xf32>
      %c0_13 = arith.constant 0 : index
      %c0_14 = arith.constant 0 : index
      %16 = vector.load %arg8[%c0_13, %c0_14] : memref<8x128xf32, #tpu.memory_space<vmem>>, vector<8x128xf32>
      tpu.vector_store %arg8[%c0_13, %c0_14], %15 {strides = array<i32>} : memref<8x128xf32, #tpu.memory_space<vmem>>, vector<8x128xf32>,
    } else {
    }
    %c0 = arith.constant 0 : index
    %c0_1 = arith.constant 0 : index
    %c0_2 = arith.constant 0 : index
    %3 = vector.load %arg2[%c0, %c0_1, %c0_2] : memref<1x32x128xf32, #tpu.memory_space<vmem>>, vector<1x32x128xf32>
    %4 = vector.shape_cast %3 : vector<1x32x128xf32> to vector<32x128xf32>
    %c0_3 = arith.constant 0 : index
    %c0_4 = arith.constant 0 : index
    %5 = vector.load %arg3[%c0_3, %c0_4] : memref<128x128xf32, #tpu.memory_space<vmem>>, vector<128x128xf32>
    %cst = arith.constant dense<0.000000e+00> : vector<32x128xf32>
    %6 = tpu.matmul %4, %5, %cst {dimension_numbers = #tpu.dot_dimension_numbers<[1], [0], [0], [1], [0, 0, 1, 1], [], []>} : vector<32x128xf32>, vector<128x128xf32>, vector<32x128xf32> -> vector<32x128xf32>
    %c0_5 = arith.constant 0 : index
    %c0_6 = arith.constant 0 : index
    %7 = vector.load %arg8[%c0_5, %c0_6] : memref<8x128xf32, #tpu.memory_space<vmem>>, vector<8x128xf32>
    %8 = vector.shape_cast %6 : vector<32x128xf32> to vector<4x8x128xf32>
    %cst_7 = arith.constant dense<0xFF800000> : vector<8x128xf32>
    %9 = vector.multi_reduction <maximumf>, %8, %cst_7 [0] : vector<4x8x128xf32> to vector<8x128xf32>
    %10 = arith.maximumf %7, %9 : vector<8x128xf32>
    %c0_8 = arith.constant 0 : index
    %c0_9 = arith.constant 0 : index
    %11 = vector.load %arg8[%c0_8, %c0_9] : memref<8x128xf32, #tpu.memory_space<vmem>>, vector<8x128xf32>
    tpu.vector_store %arg8[%c0_8, %c0_9], %10 {strides = array<i32>} : memref<8x128xf32, #tpu.memory_space<vmem>>, vector<8x128xf32>,
    %c0_i32_10 = arith.constant 0 : i32
    %12 = arith.cmpi eq, %arg1, %c0_i32_10 : i32
    %13 = arith.extui %12 : i1 to i32
    %c0_i32_11 = arith.constant 0 : i32
    %14 = arith.cmpi ne, %13, %c0_i32_11 : i32
    scf.if %14 {
      %c0_12 = arith.constant 0 : index
      %c0_13 = arith.constant 0 : index
      %15 = vector.load %arg8[%c0_12, %c0_13] : memref<8x128xf32, #tpu.memory_space<vmem>>, vector<8x128xf32>
      %cst_14 = arith.constant dense<0xFF800000> : vector<128xf32>
      %16 = vector.multi_reduction <maximumf>, %15, %cst_14 [0] : vector<8x128xf32> to vector<128xf32>
      %17 = vector.shape_cast %16 : vector<128xf32> to vector<1x128xf32>
      %c0_15 = arith.constant 0 : index
      %c0_16 = arith.constant 0 : index
      %18 = vector.load %arg4[%c0_15, %c0_16] : memref<1x128xf32, #tpu.memory_space<vmem>>, vector<1x128xf32>
      %19 = arith.addf %17, %18 : vector<1x128xf32>
      %c0_17 = arith.constant 0 : index
      %c0_18 = arith.constant 0 : index
      %20 = vector.load %arg5[%c0_17, %c0_18] : memref<1x128xf32, #tpu.memory_space<vmem>>, vector<1x128xf32>
      %21 = arith.mulf %19, %20 : vector<1x128xf32>
      %cst_19 = arith.constant dense<0.000000e+00> : vector<1xf32>
      %22 = vector.multi_reduction <add>, %21, %cst_19 [1] : vector<1x128xf32> to vector<1xf32>
      %23 = vector.shape_cast %22 : vector<1xf32> to vector<1x1xf32>
      %c0_20 = arith.constant 0 : index
      %c0_21 = arith.constant 0 : index
      %24 = memref.load %arg6[%c0_20, %c0_21] : memref<1x1xf32, #tpu.memory_space<smem>>
      %25 = vector.broadcast %24 : f32 to vector<1x1xf32>
      %26 = arith.addf %23, %25 : vector<1x1xf32>
      %c0_22 = arith.constant 0 : index
      %c0_23 = arith.constant 0 : index
      %c0_24 = arith.constant 0 : index
      %27 = vector.load %arg7[%c0_22, %c0_23, %c0_24] : memref<1x1x1xf32, #tpu.memory_space<vmem>>, vector<1x1x1xf32>
      %28 = vector.shape_cast %27 : vector<1x1x1xf32> to vector<1x1xf32>
      %29 = vector.shape_cast %26 : vector<1x1xf32> to vector<1x1x1xf32>
      tpu.vector_store %arg7[%c0_22, %c0_23, %c0_24], %29 {strides = array<i32>} : memref<1x1x1xf32, #tpu.memory_space<vmem>>, vector<1x1x1xf32>,
    } else {
    }
    return
  }
  func.func @transform_0(%arg0: i32, %arg1: i32) -> (i32, i32, i32) {
    %c0_i32 = arith.constant 0 : i32
    %c0_i32_0 = arith.constant 0 : i32
    return %arg0, %arg1, %c0_i32 : i32, i32, i32
  }
  func.func @transform_1(%arg0: i32, %arg1: i32) -> (i32, i32) {
    %c0_i32 = arith.constant 0 : i32
    %c0_i32_0 = arith.constant 0 : i32
    %c0_i32_1 = arith.constant 0 : i32
    return %c0_i32, %c0_i32_0 : i32, i32
  }
  func.func @transform_2(%arg0: i32, %arg1: i32) -> (i32, i32) {
    %c0_i32 = arith.constant 0 : i32
    %c0_i32_0 = arith.constant 0 : i32
    %c0_i32_1 = arith.constant 0 : i32
    return %c0_i32, %c0_i32_0 : i32, i32
  }
  func.func @transform_3(%arg0: i32, %arg1: i32) -> (i32, i32) {
    %c0_i32 = arith.constant 0 : i32
    %c0_i32_0 = arith.constant 0 : i32
    %c0_i32_1 = arith.constant 0 : i32
    return %c0_i32, %c0_i32_0 : i32, i32
  }
  func.func @transform_4(%arg0: i32, %arg1: i32) -> (i32, i32) {
    %c0_i32 = arith.constant 0 : i32
    %c0_i32_0 = arith.constant 0 : i32
    %c0_i32_1 = arith.constant 0 : i32
    return %c0_i32, %c0_i32_0 : i32, i32
  }
  func.func @transform_5(%arg0: i32, %arg1: i32) -> (i32, i32, i32) {
    %c0_i32 = arith.constant 0 : i32
    %c0_i32_0 = arith.constant 0 : i32
    %c0_i32_1 = arith.constant 0 : i32
    return %arg0, %c0_i32, %c0_i32_0 : i32, i32, i32
  }
}

</mosaic_0001>

<bundles_post_ra>
// kernel: tpu_custom_call.1
= control target key start
LH: loop header
LB: loop body
LE: loop exit
PB: predicated region body
PF: predicated region fallthrough
CT: control target
= control target key end

     0   :  { %s1008_s0 = inlined_call_operand.hbm [shape: f32[2,32,128], index: 0, kind: input, shape index: {}]   ;;  %s1009_s1 = inlined_call_operand.hbm [shape: f32[128,128], index: 1, kind: input, shape index: {}]   ;;  %s1010_s2 = inlined_call_operand.vmem [shape: f32[1,128], index: 2, kind: input, shape index: {}]   ;;  %s1011_s3 = inlined_call_operand.vmem [shape: f32[1,128], index: 3, kind: input, shape index: {}]   ;;  %s1012_s4 = inlined_call_operand.<no memory space> [shape: f32[1,1], index: 4, kind: input, shape index: {}]   ;;  %s1013_s5 = inlined_call_operand.vmem [shape: f32[2,1,1], index: 5, kind: output, shape index: {}]  }
   0x1   :  { %10 = sst [smem:[#allocation3]] %s1012_s4 }
   0x2   :  { %11 = vsyncpa [#allocation5], 0 }
   0x3   :  { %13 = vsyncpa [#allocation5 + $0x1], 0 }
   0x4   :  { %14 = vsyncpa [#allocation7], 0  ;;  %s832_s20 = smov 0   ;;  %s834_s21 = smov 0  }
   0x5   :  { %s836_s22 = smov 0   ;;  %s838_s23 = smov 0  }
   0x6   :  { %s840_s24 = smov 0   ;;  %s842_s25 = smov 0  }
   0x7 LB: > { %s493_s4 = sadd.s32 4294967295, %s793_s25   ;;  %p54_p0 = scmp.ne.s32.totalorder %s777_s21, %s773_s20  ;;  %s793_s25 = sphi %s842_s25, %s20_s25   ;;  %s789_s24 = sphi %s840_s24, %s1030_s24   ;;  %s785_s23 = sphi %s838_s23, %s1029_s23   ;;  %s781_s22 = sphi %s836_s22, %s1028_s22   ;;  %s777_s21 = sphi %s834_s21, %s1027_s21   ;;  %s773_s20 = sphi %s832_s20, %s1026_s20  }
   0x8   : > { %p862_p1 = scmp.eq.s32.totalorder %s493_s4, 0  ;;  %p495_p2 = scmp.ge.s32.totalorder %s793_s25, 1 }
   0x9   : > { %p175_p3 = scmp.lt.s32.totalorder %s793_s25, 3  ;;  %s795_s29 = smov [#allocation6]  }
   0xa   : > { %s1018_s26 = scalar_select %p862_p1, 1, 0 }
   0xb   : > { %p870_p4 = por %p862_p1, %p54_p0  ;;  %p874_p5 = pnand %p495_p2, %p175_p3 }
   0xc   : > { %s187_s30 = sshll.u32 %s795_s29, 4  ;;  %s32_s7 = sadd.s32 1, %s789_s24  ;;  %s188_s30 = int_to_ptr.vmem [resolvable:$true] %s187_s30 }
   0xd   : > { %s1019_s27 = scalar_select %p870_p4, 1, 0 }
   0xe   : > { %s1020_s28 = scalar_select %p874_p5, 1, 0 }
   0xf   : > { %p619_p6 = pneg %p874_p5  ;;  %s681_s10 = scalar_lea.hbm %s1009_s1, 2048 }
  0x10   : > { %p682_p8 = scmp.ne.s32.totalorder %s1009_s1, %s681_s10  ;;  %p688_p12 = scmp.lt.u32.totalorder %s681_s10, %s1009_s1 }
  0x11   : > { %p882_p7 = pnand %p619_p6, %p862_p1 }
  0x13   : > { %p683_p9 = pneg %p882_p7 }
  0x15   : > { %p684_p10 = pnand %p683_p9, %p682_p8 }
  0x17   : > { %p685_p11 = pneg %p684_p10 }
  0x19   : > { %p690_p13 = pnand %p688_p12, %p685_p11 }
  0x1b   : > { %693 = shalt.err (!%p690_p13)
}
  0x1c   : > { %s694_s15 = scalar_lea.vmem %s188_s30, 2048  ;;  %p702_p6 = scmp.lt.s32.totalorder %s188_s30, %s188_s30 }
  0x1d   : > { %p695_p0 = scmp.ne.s32.totalorder %s188_s30, %s694_s15  ;;  %p703_p1 = scmp.lt.s32.totalorder %s694_s15, %s694_s15 }
  0x1f   : > { %p697_p2 = pnand %p695_p0, %p683_p9  ;;  %p704_p4 = por %p703_p1, %p702_p6 }
  0x21   : > { %p698_p3 = pneg %p697_p2 }
  0x23   : > { %p705_p5 = pnand %p704_p4, %p698_p3 }
  0x25   : > { %708 = shalt.err (!%p705_p5)
}
  0x26   : > { %s796_s16 = smov 128   ;;  %s797_s17 = smov 8  }
  0x27   : > { %622 = dma.hbm_to_vmem [thread:$0]  (!%p882_p7), %s1009_s1, 2048, %s188_s30, [#allocation7], %s796_s16, %s796_s16, %s797_s17  }
  0x28   : > { %p34_p1 = scmp.ge.s32.totalorder %s32_s7, 2  ;;  %s41_s20 = sadd.s32 1, %s781_s22 }
  0x29   : > { %p48_p4 = scmp.ne.s32.totalorder %s781_s22, %s777_s21  ;;  %p49_p5 = scmp.eq.s32.totalorder %s793_s25, 0 }
  0x2a   : > { %s1032_s7 = smov (%p34_p1, %s32_s7), 0  ;;  %p628_p9 = scmp.lt.s32.totalorder %s793_s25, 2 }
  0x2b   : > { %p50_p8 = por %p49_p5, %p48_p4  ;;  %s36_s4 = ssub.s32 %s789_s24, %s1032_s7 }
  0x2c   : > { %s210_s29 = sand.u32 1, %s781_s22   ;;  %p39_p10 = scmp.eq.s32.totalorder %s36_s4, 0 }
  0x2d   : > { %s498_s6 = sshll.u32 %s210_s29, 5  ;;  %s506_s8 = sshll.u32 %s789_s24, 9 }
  0x2e   : > { %s918_s9 = scalar_select %p39_p10, %s781_s22, %s41_s20  }
  0x2f   : > { %s923_s30 = scalar_lea.hbm %s1008_s0, %s506_s8  ;;  %s214_s12 = scalar_lea.vmem [#allocation4], %s498_s6 }
  0x30   : > { %s223_s13 = sshll.u32 %s214_s12, 4  ;;  %p925_p7 = pnand %p628_p9, %p50_p8  ;;  %s929_s13 = int_to_ptr.vmem [resolvable:$true] %s223_s13 }
  0x31   : > { %s931_s15 = scalar_lea.sflag [#allocation5], %s210_s29  ;;  %s709_s18 = scalar_lea.hbm %s923_s30, 512 }
  0x32   : > { %p710_p11 = scmp.ne.s32.totalorder %s923_s30, %s709_s18  ;;  %p711_p12 = pneg %p925_p7 }
  0x33   : > { %s714_s4 = scalar_lea.hbm %s1008_s0, 1024  ;;  %p715_p2 = scmp.lt.u32.totalorder %s923_s30, %s1008_s0 }
  0x34   : > { %p712_p13 = pnand %p711_p12, %p710_p11  ;;  %p716_p3 = scmp.lt.u32.totalorder %s714_s4, %s709_s18 }
  0x35   : > { %p718_p1 = scmp.lt.u32.totalorder %s709_s18, %s923_s30 }
  0x36   : > { %p713_p0 = pneg %p712_p13  ;;  %p717_p6 = por %p716_p3, %p715_p2 }
  0x38   : > { %p719_p4 = por %p718_p1, %p717_p6 }
  0x3a   : > { %p720_p5 = pnand %p719_p4, %p713_p0 }
  0x3c   : > { %723 = shalt.err (!%p720_p5)
}
  0x3d   : > { %s724_s29 = scalar_lea.vmem %s929_s13, 512  ;;  %s798_s10 = smov [#allocation4]  }
  0x3e   : > { %p725_p8 = scmp.ne.s32.totalorder %s929_s13, %s724_s29  ;;  %s729_s11 = sshll.u32 %s798_s10, 4  ;;  %s730_s11 = int_to_ptr.vmem [resolvable:$false] %s729_s11 }
  0x3f   : > { %s731_s12 = scalar_lea.vmem %s730_s11, 1024  ;;  %p732_p11 = scmp.lt.s32.totalorder %s929_s13, %s730_s11 }
  0x40   : > { %p727_p9 = pnand %p725_p8, %p711_p12  ;;  %p733_p13 = scmp.lt.s32.totalorder %s731_s12, %s724_s29 }
  0x42   : > { %p728_p10 = pneg %p727_p9  ;;  %p734_p2 = por %p733_p13, %p732_p11 }
  0x44   : > { %p735_p3 = pnand %p734_p2, %p728_p10 }
  0x46   : > { %738 = shalt.err (!%p735_p3)
}
  0x47   : > { %626 = dma.hbm_to_vmem [thread:$0]  (!%p925_p7), %s923_s30, 512, %s929_s13, %s931_s15, %s796_s16, %s796_s16, %s797_s17  }
  0x48   : > { %p1023_p12 = scmp.ne.s32.totalorder %s1020_s28, 0 }
  0x49   : > { %s237_s18 = sand.u32 (!%p1023_p12), 1, %s777_s21   ;;  %p1024_p0 = scmp.ne.s32.totalorder (!%p1023_p12), %s1019_s27, 0 }
  0x4a   : > { %235 = sbr.rel (%p1023_p12) target bundleno = 499 (0x1f3), region = 40  ;;  %s502_s19 = sshll.u32 (!%p1023_p12), %s237_s18, 5 }
  0x4b   : > { %s238_s20 = scalar_lea.sflag (!%p1023_p12), [#allocation5], %s237_s18  ;;  %s965_s4 = scalar_lea.vmem (!%p1023_p12), [#allocation4], %s502_s19 }
  0x51   : > { %764 = dma.done.wait (%p1024_p0), %s238_s20, 512  }
  0x52   : > { %766 = vsyncadd (%p1024_p0), %s238_s20, 4294966784  ;;  %p1025_p6 = scmp.ne.s32.totalorder %s1018_s26, 0 }
  0x54   : > { %768 = dma.done.wait (%p1025_p6), [#allocation7], 2048  }
  0x55   : > { %770 = vsyncadd (%p1025_p6), [#allocation7], 4294965248  ;;  %v283_v0 = vld [vmem:[#allocation6] sm:$0xff]  ;;  %v284_v1 = vld [vmem:[#allocation6 + $0x8] sm:$0xff]  ;;  %vm404_vm0 = vcmask 1040384   ;;  %s408_s17 = sld [smem:[#allocation3]] }
  0x56   : > { %v285_v2 = vld [vmem:[#allocation6 + $0x10] sm:$0xff]  ;;  %v565_v3 = vpack.c.bf16 %v284_v1, %v283_v0  ;;  %v286_v4 = vld [vmem:[#allocation6 + $0x18] sm:$0xff]  ;;  %v287_v6 = vld [vmem:[#allocation6 + $0x20] sm:$0xff]  ;;  %p271_p7 = scmp.lt.s32.totalorder %s785_s23, 1  ;;  %vm411_vm1 = vcmask 0  }
  0x57   : > { %v569_v5 = vpack.c.bf16 %v286_v4, %v285_v2  ;;  %v288_v7 = vld [vmem:[#allocation6 + $0x28] sm:$0xff]  ;;  %v279_v9 = vld [vmem:[%s965_s4] sm:$0xff]  ;;  %v281_v10 = vld [vmem:[%s965_s4 + $0x10] sm:$0xff] }
  0x58   : > { %566 = vmatprep.subr.bf16.mxu0 %v565_v3  ;;  %597 = vmatprep.subr.bf16.mxu1 %v565_v3  ;;  %v573_v8 = vpack.c.bf16 %v288_v7, %v287_v6  ;;  %v289_v11 = vld [vmem:[#allocation6 + $0x30] sm:$0xff]  ;;  %v290_v12 = vld [vmem:[#allocation6 + $0x38] sm:$0xff]  ;;  %v291_v14 = vld [vmem:[#allocation6 + $0x40] sm:$0xff]  ;;  %s1034_s23 = smov (!%p271_p7, %s785_s23), 1 }
  0x59   : > { %568 = vmatpush3.bf16.msra.mxu0 %v565_v3  ;;  %605 = vmatpush3.bf16.msra.mxu1 %v565_v3  ;;  %v577_v13 = vpack.c.bf16 %v290_v12, %v289_v11  ;;  %v292_v15 = vld [vmem:[#allocation6 + $0x48] sm:$0xff]  ;;  %v293_v17 = vld [vmem:[#allocation6 + $0x50] sm:$0xff]  ;;  %v294_v18 = vld [vmem:[#allocation6 + $0x58] sm:$0xff]  ;;  %s273_s14 = scalar_lea.vmem %s1013_s5, %s1034_s23 }
  0x5a   : > { %570 = vmatprep.subr.bf16.mxu0 %v569_v5  ;;  %598 = vmatprep.subr.bf16.mxu1 %v569_v5  ;;  %v581_v16 = vpack.c.bf16 %v292_v15, %v291_v14  ;;  %v585_v19 = vpack.c.bf16 %v294_v18, %v293_v17  ;;  %v295_v20 = vld [vmem:[#allocation6 + $0x60] sm:$0xff]  ;;  %v296_v21 = vld [vmem:[#allocation6 + $0x68] sm:$0xff]  ;;  %v297_v23 = vld [vmem:[#allocation6 + $0x70] sm:$0xff] }
  0x5b   : > { %559 = vmatprep.mubr.f32.mxu0 %v279_v9  ;;  %562 = vmatprep.mubr.f32.mxu1 %v281_v10  ;;  %v589_v22 = vpack.c.bf16 %v296_v21, %v295_v20  ;;  %v298_v24 = vld [vmem:[#allocation6 + $0x78] sm:$0xff]  ;;  %v280_v26 = vld [vmem:[%s965_s4 + $0x8] sm:$0xff]  ;;  %v400_v40 = vld [vmem:[%s1010_s2] sm:$0x1]  ;;  %v409_v46 = vstv %s408_s17 }
  0x5c   : > { %v593_v25 = vpack.c.bf16 %v298_v24, %v297_v23  ;;  %v282_v27 = vld [vmem:[%s965_s4 + $0x18] sm:$0xff]  ;;  %v402_v42 = vld [vmem:[%s1011_s3] sm:$0x1] }
  0x5d   : > { %572 = vmatpush3.bf16.msra.mxu0 %v569_v5  ;;  %606 = vmatpush3.bf16.msra.mxu1 %v569_v5 }
  0x5e   : > { %574 = vmatprep.subr.bf16.mxu0 %v573_v8  ;;  %599 = vmatprep.subr.bf16.mxu1 %v573_v8 }
  0x61   : > { %576 = vmatpush3.bf16.msra.mxu0 %v573_v8  ;;  %607 = vmatpush3.bf16.msra.mxu1 %v573_v8 }
  0x62   : > { %578 = vmatprep.subr.bf16.mxu0 %v577_v13  ;;  %600 = vmatprep.subr.bf16.mxu1 %v577_v13 }
  0x65   : > { %580 = vmatpush3.bf16.msra.mxu0 %v577_v13  ;;  %608 = vmatpush3.bf16.msra.mxu1 %v577_v13 }
  0x66   : > { %582 = vmatprep.subr.bf16.mxu0 %v581_v16  ;;  %601 = vmatprep.subr.bf16.mxu1 %v581_v16 }
  0x69   : > { %584 = vmatpush3.bf16.msra.mxu0 %v581_v16  ;;  %609 = vmatpush3.bf16.msra.mxu1 %v581_v16 }
  0x6a   : > { %586 = vmatprep.subr.bf16.mxu0 %v585_v19  ;;  %602 = vmatprep.subr.bf16.mxu1 %v585_v19 }
  0x6d   : > { %588 = vmatpush3.bf16.msra.mxu0 %v585_v19  ;;  %610 = vmatpush3.bf16.msra.mxu1 %v585_v19 }
  0x6e   : > { %590 = vmatprep.subr.bf16.mxu0 %v589_v22  ;;  %603 = vmatprep.subr.bf16.mxu1 %v589_v22 }
  0x71   : > { %592 = vmatpush3.bf16.msra.mxu0 %v589_v22  ;;  %611 = vmatpush3.bf16.msra.mxu1 %v589_v22 }
  0x72   : > { %594 = vmatprep.subr.bf16.mxu0 %v593_v25  ;;  %604 = vmatprep.subr.bf16.mxu1 %v593_v25 }
  0x75   : > { %596 = vmatpush3.bf16.msra.mxu0 %v593_v25  ;;  %612 = vmatpush3.bf16.msra.mxu1 %v593_v25 }
  0x78   : > { %560 = vmatmul.mubr.f32.vlgmr.msra.gmra.mrb[0].mxu0 %v280_v26  ;;  %563 = vmatmul.mubr.f32.vlgmr.msra.gmra.mrb[0].mxu1 %v282_v27 }
 0x14b   : > { %v561_v28 = vpop.f32.mrb[0].mxu0  ;;  %v564_v29 = vpop.f32.mrb[0].mxu1 }
 0x14c   : > { %v365_v30 = vpop.f32.mrb[1].mxu0  ;;  %v375_v31 = vpop.f32.mrb[1].mxu1 }
 0x14d   : > { %v385_v32 = vmax.f32 %v365_v30, %v561_v28  ;;  %v386_v33 = vmax.f32 %v375_v31, %v564_v29 }
 0x14f   : > { %v387_v34 = vmax.f32 %v385_v32, %v386_v33 }
 0x151   : > { %v394_v35 = vrot.slane %v387_v34, 4 }
 0x153   : > { %v395_v36 = vmax.f32 %v387_v34, %v394_v35 }
 0x155   : > { %v396_v37 = vrot.slane %v395_v36, 2 }
 0x157   : > { %v397_v38 = vmax.f32 %v395_v36, %v396_v37 }
 0x159   : > { %v398_v39 = vrot.slane %v397_v38, 1 }
 0x15b   : > { %v399_v41 = vmax.f32 %v397_v38, %v398_v39 }
 0x15d   : > { %v401_v43 = vadd.f32 %v400_v40, %v399_v41 }
 0x15f   : > { %v403_v44 = vmul.f32 %v402_v42, %v401_v43 }
 0x161   : > { %v405_v45 = vsel %vm404_vm0, %v403_v44, 0.0 }
 0x162   : > { %406 = vadd.xlane.f32.xlu0 %v405_v45 }
 0x1ef   : > { %v407_v47 = vpop.xlane.xlu0 %406 }
 0x1f0   : > { %v410_v48 = vadd.f32 %v409_v46, %v407_v47 }
 0x1f2   : > { %412 = vst.msk [vmem:[%s273_s14] sm:$0x1] %vm411_vm1, %v410_v48 }
 0x1f3 PF: > { %s20_s25 = sadd.s32 1, %s793_s25   ;;  %s1026_s20 = smov %s777_s21 }
 0x1f4   : > { %p17_p1 = scmp.ge.s32.totalorder %s20_s25, 4   ;;  %s1027_s21 = smov %s781_s22 }
 0x1f5   : > { %s1028_s22 = smov %s918_s9  ;;  %s1029_s23 = smov %s789_s24 }
 0x1f6   : > { %s1030_s24 = smov %s1032_s7  ;;  %19 = sbr.rel (!%p17_p1) target bundleno = 7 (0x7), region = 92 }
 0x1fd   :  { %430 = vsyncpa [#allocation5], 1 }
 0x1fe   :  { %432 = vsyncpa [#allocation5 + $0x1], 1 }
 0x1ff   :  { %433 = vsyncpa [#allocation7], 1 }

</bundles_post_ra>
